<compile_context>
chip_gen: v6e
topology: v6e:2x2x1
jax: 0.10.0
libtpu: 0.0.40
codegen_flags: <defaults>
</compile_context>

<pallas_src>
import jax
import jax.numpy as jnp
from jax.experimental import pallas as pl
from jax.experimental.pallas import tpu as pltpu


_LANE = 1024        # lane width: large multiple of 128 (lane-dense stores/DMA)
_BLOCK_ROWS = 512   # target rows per block: ~2 MiB f32 tile, ~85% HBM roofline


def _relu_kernel(x_ref, o_ref):
    # Pure VPU elementwise max over the resident VMEM tile.
    o_ref[...] = jnp.maximum(x_ref[...], jnp.zeros((), x_ref.dtype))


def _round_up(x: int, m: int) -> int:
    return ((x + m - 1) // m) * m


@jax.jit
def relu_pallas(x: jax.Array) -> jax.Array:
    """ReLU over an arbitrary-shape tensor via a lane-dense, row-tiled Pallas kernel."""
    orig_shape = x.shape
    total = x.size

    # Build a lane-dense (rows_padded, _LANE) slab; pad with zeros (ReLU-safe).
    rows = pl.cdiv(total, _LANE)
    block_rows = min(_BLOCK_ROWS, _round_up(rows, 8))   # (8,128)-aligned tile
    rows_padded = _round_up(rows, block_rows)
    padded_total = rows_padded * _LANE

    flat = x.reshape(-1)
    flat = jnp.pad(flat, (0, padded_total - total))
    x2d = flat.reshape(rows_padded, _LANE)

    grid = (rows_padded // block_rows,)

    out2d = pl.pallas_call(
        _relu_kernel,
        out_shape=jax.ShapeDtypeStruct(x2d.shape, x2d.dtype),
        grid=grid,
        in_specs=[pl.BlockSpec((block_rows, _LANE), lambda i: (i, 0))],
        out_specs=pl.BlockSpec((block_rows, _LANE), lambda i: (i, 0)),
        input_output_aliases={0: 0},  # in-place: output reuses the input HBM buffer
        compiler_params=pltpu.CompilerParams(
            dimension_semantics=("parallel",)  # shard row-tiles across TCs (v7x)
        ),
    )(x2d)

    # Strip padding and restore the original NCHW shape.
    return out2d.reshape(-1)[:total].reshape(orig_shape)


if __name__ == "__main__":
    key = jax.random.PRNGKey(0)
    # Shape taken directly from the module's example input: [1, 1312, 7, 7]
    x518 = jax.random.normal(key, (1, 1312, 7, 7), dtype=jnp.float32)

    x519 = relu_pallas(x518)
    jax.block_until_ready(x519)

    # Sanity check against the plain JAX reference.
    ref = jnp.maximum(x518, 0.0)
    assert x519.shape == x518.shape and x519.dtype == x518.dtype
    assert bool(jnp.all(x519 == ref))

    print("KERNEL_OK")
</pallas_src>

<mosaic_0001>
module attributes {stable_mosaic.version = 11 : i64} {
  func.func @_relu_kernel(%arg0: i32, %arg1: memref<64x1024xf32, #tpu.memory_space<vmem>>, %arg2: memref<64x1024xf32, #tpu.memory_space<vmem>>) attributes {dimension_semantics = [#tpu.dimension_semantics<parallel>], iteration_bounds = array<i64: 1>, scalar_prefetch = 0 : i64, scratch_operands = 0 : i64, tpu.core_type = #tpu.core_type<tc>, window_params = [{transform_indices = @transform_0, window_bounds = array<i64: 64, 1024>}, {transform_indices = @transform_1, window_bounds = array<i64: 64, 1024>}]} {
    %c0 = arith.constant 0 : index
    %c0_0 = arith.constant 0 : index
    %0 = vector.load %arg1[%c0, %c0_0] : memref<64x1024xf32, #tpu.memory_space<vmem>>, vector<64x1024xf32>
    %cst = arith.constant 0.000000e+00 : f32
    %1 = vector.broadcast %cst : f32 to vector<64x1024xf32>
    %2 = arith.maximumf %0, %1 : vector<64x1024xf32>
    %c0_1 = arith.constant 0 : index
    %c0_2 = arith.constant 0 : index
    %3 = vector.load %arg2[%c0_1, %c0_2] : memref<64x1024xf32, #tpu.memory_space<vmem>>, vector<64x1024xf32>
    tpu.vector_store %arg2[%c0_1, %c0_2], %2 {strides = array<i32>} : memref<64x1024xf32, #tpu.memory_space<vmem>>, vector<64x1024xf32>,
    return
  }
  func.func @transform_0(%arg0: i32) -> (i32, i32) {
    %c0_i32 = arith.constant 0 : i32
    %c0_i32_0 = arith.constant 0 : i32
    return %arg0, %c0_i32 : i32, i32
  }
  func.func @transform_1(%arg0: i32) -> (i32, i32) {
    %c0_i32 = arith.constant 0 : i32
    %c0_i32_0 = arith.constant 0 : i32
    return %arg0, %c0_i32 : i32, i32
  }
}

</mosaic_0001>

<bundles_post_ra>
// kernel: relu_pallas.1
= control target key start
LH: loop header
LB: loop body
LE: loop exit
PB: predicated region body
PF: predicated region fallthrough
CT: control target
= control target key end

     0   :  { %s598_s0 = inlined_call_operand.vmem [shape: f32[64,1024], index: 0, kind: input, shape index: {}, may-alias: {0,1}]   ;;  %s599_s1 = inlined_call_operand.vmem [shape: f32[64,1024], index: 1, kind: output, shape index: {}, may-alias: {0,1}]  }
   0x1   :  { %v8_v0 = vld [vmem:[%s598_s0] sm:$0xff]  ;;  %v9_v1 = vld [vmem:[%s598_s0 + $0x8] sm:$0xff]  ;;  %v10_v2 = vld [vmem:[%s598_s0 + $0x10] sm:$0xff] }
   0x2   :  { %v72_v3 = vmax.f32 %v8_v0, 0.0  ;;  %v73_v4 = vmax.f32 %v9_v1, 0.0  ;;  %v74_v5 = vmax.f32 %v10_v2, 0.0  ;;  %v11_v6 = vld [vmem:[%s598_s0 + $0x18] sm:$0xff]  ;;  %v12_v7 = vld [vmem:[%s598_s0 + $0x20] sm:$0xff]  ;;  %v13_v8 = vld [vmem:[%s598_s0 + $0x28] sm:$0xff] }
   0x3   :  { %v75_v9 = vmax.f32 %v11_v6, 0.0  ;;  %v76_v10 = vmax.f32 %v12_v7, 0.0  ;;  %v77_v11 = vmax.f32 %v13_v8, 0.0  ;;  %v14_v12 = vld [vmem:[%s598_s0 + $0x30] sm:$0xff]  ;;  %v15_v13 = vld [vmem:[%s598_s0 + $0x38] sm:$0xff]  ;;  %v16_v14 = vld [vmem:[%s598_s0 + $0x40] sm:$0xff] }
   0x4   :  { %136 = vst [vmem:[%s599_s1] sm:$0xff] %v72_v3  ;;  %137 = vst [vmem:[%s599_s1 + $0x8] sm:$0xff] %v73_v4  ;;  %v78_v15 = vmax.f32 %v14_v12, 0.0  ;;  %v79_v16 = vmax.f32 %v15_v13, 0.0  ;;  %v80_v17 = vmax.f32 %v16_v14, 0.0 }
   0x5   :  { %138 = vst [vmem:[%s599_s1 + $0x10] sm:$0xff] %v74_v5 }
   0xc   :  { %v17_v18 = vld [vmem:[%s598_s0 + $0x48] sm:$0xff]  ;;  %v18_v19 = vld [vmem:[%s598_s0 + $0x50] sm:$0xff]  ;;  %v19_v20 = vld [vmem:[%s598_s0 + $0x58] sm:$0xff] }
   0xd   :  { %139 = vst [vmem:[%s599_s1 + $0x18] sm:$0xff] %v75_v9  ;;  %140 = vst [vmem:[%s599_s1 + $0x20] sm:$0xff] %v76_v10  ;;  %v81_v21 = vmax.f32 %v17_v18, 0.0  ;;  %v82_v22 = vmax.f32 %v18_v19, 0.0  ;;  %v83_v23 = vmax.f32 %v19_v20, 0.0 }
   0xe   :  { %141 = vst [vmem:[%s599_s1 + $0x28] sm:$0xff] %v77_v11 }
  0x15   :  { %v20_v24 = vld [vmem:[%s598_s0 + $0x60] sm:$0xff]  ;;  %v21_v25 = vld [vmem:[%s598_s0 + $0x68] sm:$0xff]  ;;  %v22_v26 = vld [vmem:[%s598_s0 + $0x70] sm:$0xff] }
  0x16   :  { %142 = vst [vmem:[%s599_s1 + $0x30] sm:$0xff] %v78_v15  ;;  %143 = vst [vmem:[%s599_s1 + $0x38] sm:$0xff] %v79_v16  ;;  %v84_v27 = vmax.f32 %v20_v24, 0.0  ;;  %v85_v28 = vmax.f32 %v21_v25, 0.0  ;;  %v86_v29 = vmax.f32 %v22_v26, 0.0 }
  0x17   :  { %144 = vst [vmem:[%s599_s1 + $0x40] sm:$0xff] %v80_v17 }
  0x1e   :  { %v23_v30 = vld [vmem:[%s598_s0 + $0x78] sm:$0xff]  ;;  %v24_v31 = vld [vmem:[%s598_s0 + $0x80] sm:$0xff]  ;;  %v25_v32 = vld [vmem:[%s598_s0 + $0x88] sm:$0xff] }
  0x1f   :  { %145 = vst [vmem:[%s599_s1 + $0x48] sm:$0xff] %v81_v21  ;;  %146 = vst [vmem:[%s599_s1 + $0x50] sm:$0xff] %v82_v22  ;;  %v87_v33 = vmax.f32 %v23_v30, 0.0  ;;  %v88_v34 = vmax.f32 %v24_v31, 0.0  ;;  %v89_v35 = vmax.f32 %v25_v32, 0.0 }
  0x20   :  { %147 = vst [vmem:[%s599_s1 + $0x58] sm:$0xff] %v83_v23 }
  0x27   :  { %v26_v36 = vld [vmem:[%s598_s0 + $0x90] sm:$0xff]  ;;  %v27_v37 = vld [vmem:[%s598_s0 + $0x98] sm:$0xff]  ;;  %v28_v38 = vld [vmem:[%s598_s0 + $0xa0] sm:$0xff] }
  0x28   :  { %148 = vst [vmem:[%s599_s1 + $0x60] sm:$0xff] %v84_v27  ;;  %149 = vst [vmem:[%s599_s1 + $0x68] sm:$0xff] %v85_v28  ;;  %v90_v39 = vmax.f32 %v26_v36, 0.0  ;;  %v91_v40 = vmax.f32 %v27_v37, 0.0  ;;  %v92_v41 = vmax.f32 %v28_v38, 0.0 }
  0x29   :  { %150 = vst [vmem:[%s599_s1 + $0x70] sm:$0xff] %v86_v29 }
  0x30   :  { %v29_v42 = vld [vmem:[%s598_s0 + $0xa8] sm:$0xff]  ;;  %v30_v43 = vld [vmem:[%s598_s0 + $0xb0] sm:$0xff]  ;;  %v31_v44 = vld [vmem:[%s598_s0 + $0xb8] sm:$0xff] }
  0x31   :  { %151 = vst [vmem:[%s599_s1 + $0x78] sm:$0xff] %v87_v33  ;;  %152 = vst [vmem:[%s599_s1 + $0x80] sm:$0xff] %v88_v34  ;;  %v93_v45 = vmax.f32 %v29_v42, 0.0  ;;  %v94_v46 = vmax.f32 %v30_v43, 0.0  ;;  %v95_v47 = vmax.f32 %v31_v44, 0.0 }
  0x32   :  { %153 = vst [vmem:[%s599_s1 + $0x88] sm:$0xff] %v89_v35 }
  0x39   :  { %v32_v48 = vld [vmem:[%s598_s0 + $0xc0] sm:$0xff]  ;;  %v33_v49 = vld [vmem:[%s598_s0 + $0xc8] sm:$0xff]  ;;  %v34_v50 = vld [vmem:[%s598_s0 + $0xd0] sm:$0xff] }
  0x3a   :  { %154 = vst [vmem:[%s599_s1 + $0x90] sm:$0xff] %v90_v39  ;;  %155 = vst [vmem:[%s599_s1 + $0x98] sm:$0xff] %v91_v40  ;;  %v96_v51 = vmax.f32 %v32_v48, 0.0  ;;  %v97_v52 = vmax.f32 %v33_v49, 0.0  ;;  %v98_v53 = vmax.f32 %v34_v50, 0.0 }
  0x3b   :  { %156 = vst [vmem:[%s599_s1 + $0xa0] sm:$0xff] %v92_v41 }
  0x42   :  { %v35_v54 = vld [vmem:[%s598_s0 + $0xd8] sm:$0xff]  ;;  %v36_v55 = vld [vmem:[%s598_s0 + $0xe0] sm:$0xff]  ;;  %v37_v56 = vld [vmem:[%s598_s0 + $0xe8] sm:$0xff] }
  0x43   :  { %157 = vst [vmem:[%s599_s1 + $0xa8] sm:$0xff] %v93_v45  ;;  %158 = vst [vmem:[%s599_s1 + $0xb0] sm:$0xff] %v94_v46  ;;  %v99_v57 = vmax.f32 %v35_v54, 0.0  ;;  %v100_v58 = vmax.f32 %v36_v55, 0.0  ;;  %v101_v59 = vmax.f32 %v37_v56, 0.0 }
  0x44   :  { %159 = vst [vmem:[%s599_s1 + $0xb8] sm:$0xff] %v95_v47 }
  0x4b   :  { %v38_v60 = vld [vmem:[%s598_s0 + $0xf0] sm:$0xff]  ;;  %v39_v61 = vld [vmem:[%s598_s0 + $0xf8] sm:$0xff]  ;;  %v40_v62 = vld [vmem:[%s598_s0 + $0x100] sm:$0xff] }
  0x4c   :  { %160 = vst [vmem:[%s599_s1 + $0xc0] sm:$0xff] %v96_v51  ;;  %161 = vst [vmem:[%s599_s1 + $0xc8] sm:$0xff] %v97_v52  ;;  %v102_v63 = vmax.f32 %v38_v60, 0.0  ;;  %v103_v0 = vmax.f32 %v39_v61, 0.0  ;;  %v104_v1 = vmax.f32 %v40_v62, 0.0 }
  0x4d   :  { %162 = vst [vmem:[%s599_s1 + $0xd0] sm:$0xff] %v98_v53 }
  0x54   :  { %v41_v2 = vld [vmem:[%s598_s0 + $0x108] sm:$0xff]  ;;  %v42_v3 = vld [vmem:[%s598_s0 + $0x110] sm:$0xff]  ;;  %v43_v4 = vld [vmem:[%s598_s0 + $0x118] sm:$0xff] }
  0x55   :  { %163 = vst [vmem:[%s599_s1 + $0xd8] sm:$0xff] %v99_v57  ;;  %164 = vst [vmem:[%s599_s1 + $0xe0] sm:$0xff] %v100_v58  ;;  %v105_v5 = vmax.f32 %v41_v2, 0.0  ;;  %v106_v6 = vmax.f32 %v42_v3, 0.0  ;;  %v107_v7 = vmax.f32 %v43_v4, 0.0 }
  0x56   :  { %165 = vst [vmem:[%s599_s1 + $0xe8] sm:$0xff] %v101_v59 }
  0x5d   :  { %v44_v8 = vld [vmem:[%s598_s0 + $0x120] sm:$0xff]  ;;  %v45_v9 = vld [vmem:[%s598_s0 + $0x128] sm:$0xff]  ;;  %v46_v10 = vld [vmem:[%s598_s0 + $0x130] sm:$0xff] }
  0x5e   :  { %166 = vst [vmem:[%s599_s1 + $0xf0] sm:$0xff] %v102_v63  ;;  %167 = vst [vmem:[%s599_s1 + $0xf8] sm:$0xff] %v103_v0  ;;  %v108_v11 = vmax.f32 %v44_v8, 0.0  ;;  %v109_v12 = vmax.f32 %v45_v9, 0.0  ;;  %v110_v13 = vmax.f32 %v46_v10, 0.0 }
  0x5f   :  { %168 = vst [vmem:[%s599_s1 + $0x100] sm:$0xff] %v104_v1 }
  0x66   :  { %v47_v14 = vld [vmem:[%s598_s0 + $0x138] sm:$0xff]  ;;  %v48_v15 = vld [vmem:[%s598_s0 + $0x140] sm:$0xff]  ;;  %v49_v16 = vld [vmem:[%s598_s0 + $0x148] sm:$0xff] }
  0x67   :  { %169 = vst [vmem:[%s599_s1 + $0x108] sm:$0xff] %v105_v5  ;;  %170 = vst [vmem:[%s599_s1 + $0x110] sm:$0xff] %v106_v6  ;;  %v111_v17 = vmax.f32 %v47_v14, 0.0  ;;  %v112_v18 = vmax.f32 %v48_v15, 0.0  ;;  %v113_v19 = vmax.f32 %v49_v16, 0.0 }
  0x68   :  { %171 = vst [vmem:[%s599_s1 + $0x118] sm:$0xff] %v107_v7 }
  0x6f   :  { %v50_v20 = vld [vmem:[%s598_s0 + $0x150] sm:$0xff]  ;;  %v51_v21 = vld [vmem:[%s598_s0 + $0x158] sm:$0xff]  ;;  %v52_v22 = vld [vmem:[%s598_s0 + $0x160] sm:$0xff] }
  0x70   :  { %172 = vst [vmem:[%s599_s1 + $0x120] sm:$0xff] %v108_v11  ;;  %173 = vst [vmem:[%s599_s1 + $0x128] sm:$0xff] %v109_v12  ;;  %v114_v23 = vmax.f32 %v50_v20, 0.0  ;;  %v115_v24 = vmax.f32 %v51_v21, 0.0  ;;  %v116_v25 = vmax.f32 %v52_v22, 0.0 }
  0x71   :  { %174 = vst [vmem:[%s599_s1 + $0x130] sm:$0xff] %v110_v13 }
  0x78   :  { %v53_v26 = vld [vmem:[%s598_s0 + $0x168] sm:$0xff]  ;;  %v54_v27 = vld [vmem:[%s598_s0 + $0x170] sm:$0xff]  ;;  %v55_v28 = vld [vmem:[%s598_s0 + $0x178] sm:$0xff] }
  0x79   :  { %175 = vst [vmem:[%s599_s1 + $0x138] sm:$0xff] %v111_v17  ;;  %176 = vst [vmem:[%s599_s1 + $0x140] sm:$0xff] %v112_v18  ;;  %v117_v29 = vmax.f32 %v53_v26, 0.0  ;;  %v118_v30 = vmax.f32 %v54_v27, 0.0  ;;  %v119_v31 = vmax.f32 %v55_v28, 0.0 }
  0x7a   :  { %177 = vst [vmem:[%s599_s1 + $0x148] sm:$0xff] %v113_v19 }
  0x81   :  { %v56_v32 = vld [vmem:[%s598_s0 + $0x180] sm:$0xff]  ;;  %v57_v33 = vld [vmem:[%s598_s0 + $0x188] sm:$0xff]  ;;  %v58_v34 = vld [vmem:[%s598_s0 + $0x190] sm:$0xff] }
  0x82   :  { %178 = vst [vmem:[%s599_s1 + $0x150] sm:$0xff] %v114_v23  ;;  %179 = vst [vmem:[%s599_s1 + $0x158] sm:$0xff] %v115_v24  ;;  %v120_v35 = vmax.f32 %v56_v32, 0.0  ;;  %v121_v36 = vmax.f32 %v57_v33, 0.0  ;;  %v122_v37 = vmax.f32 %v58_v34, 0.0 }
  0x83   :  { %180 = vst [vmem:[%s599_s1 + $0x160] sm:$0xff] %v116_v25 }
  0x8a   :  { %v59_v38 = vld [vmem:[%s598_s0 + $0x198] sm:$0xff]  ;;  %v60_v39 = vld [vmem:[%s598_s0 + $0x1a0] sm:$0xff]  ;;  %v61_v40 = vld [vmem:[%s598_s0 + $0x1a8] sm:$0xff] }
  0x8b   :  { %181 = vst [vmem:[%s599_s1 + $0x168] sm:$0xff] %v117_v29  ;;  %182 = vst [vmem:[%s599_s1 + $0x170] sm:$0xff] %v118_v30  ;;  %v123_v41 = vmax.f32 %v59_v38, 0.0  ;;  %v124_v42 = vmax.f32 %v60_v39, 0.0  ;;  %v125_v43 = vmax.f32 %v61_v40, 0.0 }
  0x8c   :  { %183 = vst [vmem:[%s599_s1 + $0x178] sm:$0xff] %v119_v31 }
  0x93   :  { %v62_v44 = vld [vmem:[%s598_s0 + $0x1b0] sm:$0xff]  ;;  %v63_v45 = vld [vmem:[%s598_s0 + $0x1b8] sm:$0xff]  ;;  %v64_v46 = vld [vmem:[%s598_s0 + $0x1c0] sm:$0xff] }
  0x94   :  { %184 = vst [vmem:[%s599_s1 + $0x180] sm:$0xff] %v120_v35  ;;  %185 = vst [vmem:[%s599_s1 + $0x188] sm:$0xff] %v121_v36  ;;  %v126_v47 = vmax.f32 %v62_v44, 0.0  ;;  %v127_v48 = vmax.f32 %v63_v45, 0.0  ;;  %v128_v49 = vmax.f32 %v64_v46, 0.0 }
  0x95   :  { %186 = vst [vmem:[%s599_s1 + $0x190] sm:$0xff] %v122_v37 }
  0x9c   :  { %v65_v50 = vld [vmem:[%s598_s0 + $0x1c8] sm:$0xff]  ;;  %v66_v51 = vld [vmem:[%s598_s0 + $0x1d0] sm:$0xff]  ;;  %v67_v52 = vld [vmem:[%s598_s0 + $0x1d8] sm:$0xff] }
  0x9d   :  { %187 = vst [vmem:[%s599_s1 + $0x198] sm:$0xff] %v123_v41  ;;  %188 = vst [vmem:[%s599_s1 + $0x1a0] sm:$0xff] %v124_v42  ;;  %v129_v53 = vmax.f32 %v65_v50, 0.0  ;;  %v130_v54 = vmax.f32 %v66_v51, 0.0  ;;  %v131_v55 = vmax.f32 %v67_v52, 0.0 }
  0x9e   :  { %189 = vst [vmem:[%s599_s1 + $0x1a8] sm:$0xff] %v125_v43 }
  0xa5   :  { %v68_v56 = vld [vmem:[%s598_s0 + $0x1e0] sm:$0xff]  ;;  %v69_v57 = vld [vmem:[%s598_s0 + $0x1e8] sm:$0xff]  ;;  %v70_v58 = vld [vmem:[%s598_s0 + $0x1f0] sm:$0xff] }
  0xa6   :  { %190 = vst [vmem:[%s599_s1 + $0x1b0] sm:$0xff] %v126_v47  ;;  %191 = vst [vmem:[%s599_s1 + $0x1b8] sm:$0xff] %v127_v48  ;;  %v132_v59 = vmax.f32 %v68_v56, 0.0  ;;  %v133_v60 = vmax.f32 %v69_v57, 0.0  ;;  %v134_v61 = vmax.f32 %v70_v58, 0.0 }
  0xa7   :  { %192 = vst [vmem:[%s599_s1 + $0x1c0] sm:$0xff] %v128_v49 }
  0xae   :  { %v71_v62 = vld [vmem:[%s598_s0 + $0x1f8] sm:$0xff] }
  0xaf   :  { %193 = vst [vmem:[%s599_s1 + $0x1c8] sm:$0xff] %v129_v53  ;;  %194 = vst [vmem:[%s599_s1 + $0x1d0] sm:$0xff] %v130_v54  ;;  %v135_v63 = vmax.f32 %v71_v62, 0.0 }
  0xb0   :  { %195 = vst [vmem:[%s599_s1 + $0x1d8] sm:$0xff] %v131_v55  ;;  %196 = vst [vmem:[%s599_s1 + $0x1e0] sm:$0xff] %v132_v59 }
  0xb1   :  { %197 = vst [vmem:[%s599_s1 + $0x1e8] sm:$0xff] %v133_v60  ;;  %198 = vst [vmem:[%s599_s1 + $0x1f0] sm:$0xff] %v134_v61 }
  0xb2   :  { %199 = vst [vmem:[%s599_s1 + $0x1f8] sm:$0xff] %v135_v63 }

</bundles_post_ra>
